<compile_context>
chip_gen: v7x
topology: tpu7x:2x2x1
jax: 0.10.0
libtpu: 0.0.40
codegen_flags: <defaults>
</compile_context>

<pallas_src>
from functools import partial

import jax
import jax.numpy as jnp
import numpy as np
from jax.experimental import pallas as pl
from jax.experimental.pallas import tpu as pltpu


# ----------------------------- Pallas kernel -------------------------------

def _make_up_kernel(H, W, N, Cin_p, Cmid_p, fused):
    """Fused (upsample+pad+concat) -> (conv3x3 -> LeakyReLU)*2 kernel builder."""
    HW = H * W
    L = N * HW

    # Static lane-roll amounts for the 9 taps of a 3x3 / pad=1 conv.
    # tapped[:, l] must equal x[:, l + oy*W + ox]  ->  roll by (-(oy*W+ox)) mod L.
    shifts = []
    for oy in (-1, 0, 1):           # ky = oy + 1 (matches weight repack order)
        for ox in (-1, 0, 1):       # kx = ox + 1
            shifts.append((-(oy * W + ox)) % L)

    def conv_block(x_f32, mask_ref, w_ref, b_ref, col_ref, Cp):
        # x_f32: (Cp, L) f32.  Build the (9*Cp, L) im2col operand in-place in the
        # VMEM scratch (tap-major rows, matching the weight repack), then one MXU
        # matmul + bias + LeakyReLU(0.2).
        for t, sh in enumerate(shifts):
            tap = x_f32 if sh == 0 else pltpu.roll(x_f32, sh, axis=1)
            m = mask_ref[t:t + 1, :]                       # (1, L) f32, static row
            col_ref[t * Cp:(t + 1) * Cp, :] = (tap * m).astype(col_ref.dtype)
        y = jnp.dot(w_ref[...], col_ref[...],
                    preferred_element_type=jnp.float32) + b_ref[...]
        return jnp.maximum(y, 0.2 * y)                     # LeakyReLU, f32

    if fused:
        def kernel(x2_ref, x1_ref, ut_ref, mask_ref,
                   w1_ref, b1_ref, w2_ref, b2_ref,
                   out_ref, col1_ref, col2_ref):
            # Fused bilinear-2x upsample + F.pad of x1: one MXU matmul shared by
            # all batch images (x1 rows are ordered n*Cin_p + c, channel-placed
            # at rows [C2, C2+C1) so torch.cat([x2, x1], 1) is just an add).
            x1u = jnp.dot(x1_ref[...], ut_ref[...],
                          preferred_element_type=jnp.float32)   # (N*Cin_p, HW)
            x = jnp.concatenate(
                [x2_ref[:, n * HW:(n + 1) * HW].astype(jnp.float32)
                 + x1u[n * Cin_p:(n + 1) * Cin_p, :]
                 for n in range(N)], axis=1)                    # (Cin_p, L) f32
            y = conv_block(x, mask_ref, w1_ref, b1_ref, col1_ref, Cin_p)
            z = conv_block(y, mask_ref, w2_ref, b2_ref, col2_ref, Cmid_p)
            out_ref[...] = z.astype(out_ref.dtype)
    else:
        def kernel(x_ref, mask_ref,
                   w1_ref, b1_ref, w2_ref, b2_ref,
                   out_ref, col1_ref, col2_ref):
            x = x_ref[...].astype(jnp.float32)                  # (Cin_p, L)
            y = conv_block(x, mask_ref, w1_ref, b1_ref, col1_ref, Cin_p)
            z = conv_block(y, mask_ref, w2_ref, b2_ref, col2_ref, Cmid_p)
            out_ref[...] = z.astype(out_ref.dtype)

    return kernel


# ------------------------------ host-side prep ------------------------------

def _round_up(x, m):
    return (x + m - 1) // m * m


def _padded_upsample_matrix(n_in, n_out, offset):
    """(n_out, n_in) matrix = bilinear 2x upsample (align_corners=True) of a
    length-n_in axis, placed at `offset` (F.pad) with zeros elsewhere."""
    n_up = 2 * n_in
    M = np.zeros((n_out, n_in), np.float32)
    for i in range(n_out):
        u = i - offset
        if 0 <= u < n_up:
            if n_in == 1:
                M[i, 0] = 1.0
            else:
                src = u * (n_in - 1) / (n_up - 1)
                lo = min(int(np.floor(src)), n_in - 2)
                frac = src - lo
                M[i, lo] += 1.0 - frac
                M[i, lo + 1] += frac
    return M


def _boundary_masks(H, W, N):
    """(9, N*H*W) f32: per-tap in-image validity masks, tiled over the batch."""
    hh = np.arange(H)[:, None]
    ww = np.arange(W)[None, :]
    rows = []
    for oy in (-1, 0, 1):
        for ox in (-1, 0, 1):
            valid = ((hh + oy >= 0) & (hh + oy < H) &
                     (ww + ox >= 0) & (ww + ox < W))
            rows.append(valid.reshape(-1).astype(np.float32))
    return np.tile(np.stack(rows, axis=0), (1, N))


def up_forward(x1, x2, w1, b1, w2, b2, *, compute_dtype=jnp.float32,
               fuse_upsample=None):
    """Equivalent of up.forward(x1, x2).  All I/O is NCHW float32.

    compute_dtype: dtype of the MXU operands (jnp.bfloat16 on v6e/v7x for ~2x MXU
    throughput and half the DMA bytes; accumulation stays f32).
    fuse_upsample: None = auto (fuse the kron upsample matmul only when the
    upsample matrix fits a small VMEM budget; otherwise do the cheap separable
    upsample+pad in XLA on the host and feed the kernel a pre-combined slab).
    """
    N, C1, H1, W1 = x1.shape
    N2, C2, H2, W2 = x2.shape
    assert N == N2
    Cin, Cmid, Cout = C1 + C2, w1.shape[3], w2.shape[3]
    HW1, HW2 = H1 * W1, H2 * W2
    L = N * HW2

    cd = jnp.dtype(compute_dtype)
    # Channel padding keeps every scratch store / concat sublane-packing aligned
    # (8 rows for 4-byte, 16 for 2-byte operands).  Pad rows carry exact zeros.
    sub = 8 if cd.itemsize >= 4 else (16 if cd.itemsize == 2 else 32)
    Cin_p, Cmid_p, Cout_p = (_round_up(Cin, sub), _round_up(Cmid, sub),
                             _round_up(Cout, sub))

    if fuse_upsample is None:
        # Keep the dense (HW1, HW2) upsample matrix in-kernel only while it is
        # tiny relative to every generation's VMEM (v7x has 64 MiB total).
        fuse_upsample = HW1 * HW2 * cd.itemsize <= (4 << 20)

    # Per-tap boundary masks (batch-tiled): constant, resident in VMEM.
    mask = jnp.asarray(_boundary_masks(H2, W2, N))                  # (9, L) f32

    # x2 slab: channels at rows [0, C2), batch folded into lanes.
    x2r = jnp.transpose(x2.reshape(N, C2, HW2), (1, 0, 2)).reshape(C2, L)
    x2_slab = jnp.zeros((Cin_p, L), jnp.float32).at[:C2].set(x2r)

    # Weights: fold the 3x3 taps into the contraction axis, pad channel dims.
    w1r = jnp.transpose(w1, (3, 0, 1, 2))                           # (Cmid,3,3,Cin)
    w1cat = (jnp.zeros((Cmid_p, 3, 3, Cin_p), jnp.float32)
             .at[:Cmid, :, :, :Cin].set(w1r).reshape(Cmid_p, 9 * Cin_p))
    w2r = jnp.transpose(w2, (3, 0, 1, 2))                           # (Cout,3,3,Cmid)
    w2cat = (jnp.zeros((Cout_p, 3, 3, Cmid_p), jnp.float32)
             .at[:Cout, :, :, :Cmid].set(w2r).reshape(Cout_p, 9 * Cmid_p))
    b1p = jnp.zeros((Cmid_p, 1), jnp.float32).at[:Cmid, 0].set(b1)
    b2p = jnp.zeros((Cout_p, 1), jnp.float32).at[:Cout, 0].set(b2)

    Mh = _padded_upsample_matrix(H1, H2, (H2 - 2 * H1) // 2)        # (H2, H1)
    Mw = _padded_upsample_matrix(W1, W2, (W2 - 2 * W1) // 2)        # (W2, W1)

    kernel = _make_up_kernel(H2, W2, N, Cin_p, Cmid_p, fuse_upsample)

    if fuse_upsample:
        # Combined upsample+pad matrix: ut[h1*W1+w1, h2*W2+w2] = Mh[h2,h1]*Mw[w2,w1]
        ut = jnp.asarray(np.einsum('ih,jw->hwij', Mh, Mw).reshape(HW1, HW2))
        # x1 LHS rows ordered n*Cin_p + c, channel-placed at [C2, C2+C1).
        x1r = jnp.transpose(x1.reshape(N, C1, HW1), (1, 0, 2))      # (C1, N, HW1)
        x1_lhs = (jnp.zeros((Cin_p, N, HW1), jnp.float32)
                  .at[C2:C2 + C1].set(x1r))
        x1_lhs = jnp.transpose(x1_lhs, (1, 0, 2)).reshape(N * Cin_p, HW1)
        inputs = (x2_slab.astype(cd), x1_lhs.astype(cd), ut.astype(cd), mask,
                  w1cat.astype(cd), b1p, w2cat.astype(cd), b2p)
    else:
        # Separable upsample+pad in XLA (O(Cin*HW*(H1+W1)), a few KiB of weights),
        # then place into the combined slab at rows [C2, C2+C1).
        x1_up = jnp.einsum('ih,jw,nchw->ncij', jnp.asarray(Mh), jnp.asarray(Mw),
                           x1)                                      # (N,C1,H2,W2)
        x1r = jnp.transpose(x1_up.reshape(N, C1, HW2), (1, 0, 2)).reshape(C1, L)
        x_slab = x2_slab.at[C2:C2 + C1].set(x1r)
        inputs = (x_slab.astype(cd), mask,
                  w1cat.astype(cd), b1p, w2cat.astype(cd), b2p)

    in_specs = [pl.BlockSpec(a.shape, lambda i: (0, 0)) for a in inputs]

    out = pl.pallas_call(
        kernel,
        out_shape=jax.ShapeDtypeStruct((Cout_p, L), jnp.float32),
        grid_spec=pltpu.PrefetchScalarGridSpec(
            num_scalar_prefetch=0,
            grid=(1,),                      # whole batch folded into lanes
            in_specs=in_specs,
            out_specs=pl.BlockSpec((Cout_p, L), lambda i: (0, 0)),
            scratch_shapes=[pltpu.VMEM((9 * Cin_p, L), cd),
                            pltpu.VMEM((9 * Cmid_p, L), cd)],
        ),
        compiler_params=pltpu.CompilerParams(
            dimension_semantics=("arbitrary",)),
    )(*inputs)

    out = out.reshape(Cout_p, N, H2, W2)[:Cout]
    return jnp.transpose(out, (1, 0, 2, 3))


# ----------------------------- reference (check) ----------------------------

def _interp_matrix(n_in, n_out):
    if n_in == 1:
        return jnp.ones((n_out, 1), jnp.float32)
    src = jnp.arange(n_out, dtype=jnp.float32) * (n_in - 1) / (n_out - 1)
    lo = jnp.clip(jnp.floor(src).astype(jnp.int32), 0, n_in - 2)
    frac = src - lo.astype(jnp.float32)
    rows = jnp.arange(n_out)
    M = jnp.zeros((n_out, n_in), jnp.float32)
    M = M.at[rows, lo].add(1.0 - frac)
    M = M.at[rows, lo + 1].add(frac)
    return M


def _upsample_pad_concat(x1, x2):
    _, _, H1, W1 = x1.shape
    _, _, H2, W2 = x2.shape
    Mh = _interp_matrix(H1, 2 * H1)
    Mw = _interp_matrix(W1, 2 * W1)
    x1_up = jnp.einsum('ih,jw,nchw->ncij', Mh, Mw, x1)
    diffY = H2 - x1_up.shape[2]
    diffX = W2 - x1_up.shape[3]
    x1_up = jnp.pad(
        x1_up,
        ((0, 0), (0, 0),
         (diffY // 2, diffY - diffY // 2),
         (diffX // 2, diffX - diffX // 2)))
    return jnp.concatenate([x2, x1_up], axis=1)


def _ref_double_conv(x_nchw, w1, b1, w2, b2):
    dn = ('NCHW', 'HWIO', 'NCHW')
    y = jax.lax.conv_general_dilated(x_nchw, w1, (1, 1), 'SAME', dimension_numbers=dn)
    y = y + b1.reshape(1, -1, 1, 1)
    y = jnp.where(y > 0, y, 0.2 * y)
    y = jax.lax.conv_general_dilated(y, w2, (1, 1), 'SAME', dimension_numbers=dn)
    y = y + b2.reshape(1, -1, 1, 1)
    return jnp.where(y > 0, y, 0.2 * y)


def _ref_up_forward(x1, x2, w1, b1, w2, b2):
    return _ref_double_conv(_upsample_pad_concat(x1, x2), w1, b1, w2, b2)


# --------------------------------- main --------------------------------------

if __name__ == "__main__":
    # up(in_ch=8, out_ch=4, bilinear=True)
    in_ch, out_ch = 8, 4
    N = 2
    H1 = W1 = 8      # x1 (low-res path):    in_ch//2 channels
    H2 = W2 = 16     # x2 (skip connection): in_ch//2 channels

    key = jax.random.PRNGKey(0)
    k1, k2, k3, k4, k5, k6 = jax.random.split(key, 6)

    x1 = jax.random.normal(k1, (N, in_ch // 2, H1, W1), jnp.float32)
    x2 = jax.random.normal(k2, (N, in_ch // 2, H2, W2), jnp.float32)
    w1 = 0.1 * jax.random.normal(k3, (3, 3, in_ch, out_ch), jnp.float32)   # HWIO
    b1 = 0.1 * jax.random.normal(k4, (out_ch,), jnp.float32)
    w2 = 0.1 * jax.random.normal(k5, (3, 3, out_ch, out_ch), jnp.float32)  # HWIO
    b2 = 0.1 * jax.random.normal(k6, (out_ch,), jnp.float32)

    y_ref = _ref_up_forward(x1, x2, w1, b1, w2, b2)
    jax.block_until_ready(y_ref)

    # f32 MXU-operand path, fused in-kernel upsample: tight check.
    up_f32 = jax.jit(up_forward)
    y = up_f32(x1, x2, w1, b1, w2, b2)
    jax.block_until_ready(y)
    assert y.shape == (N, out_ch, H2, W2), y.shape
    np.testing.assert_allclose(np.asarray(y), np.asarray(y_ref), atol=2e-4, rtol=2e-4)

    # Gated fallback path (host-side separable upsample, kernel does only convs).
    up_gate = jax.jit(partial(up_forward, fuse_upsample=False))
    y_g = up_gate(x1, x2, w1, b1, w2, b2)
    jax.block_until_ready(y_g)
    np.testing.assert_allclose(np.asarray(y_g), np.asarray(y_ref), atol=2e-4, rtol=2e-4)

    # bf16 MXU-operand path (v6e/v7x fast path): f32 accumulation, looser tolerance.
    up_bf16 = jax.jit(partial(up_forward, compute_dtype=jnp.bfloat16))
    y_b = up_bf16(x1, x2, w1, b1, w2, b2)
    jax.block_until_ready(y_b)
    np.testing.assert_allclose(np.asarray(y_b), np.asarray(y_ref), atol=5e-2, rtol=5e-2)

    print("KERNEL_OK")
</pallas_src>

<mosaic_0001>
module attributes {stable_mosaic.version = 11 : i64} {
  func.func @kernel(%arg0: i32, %arg1: memref<8x512xf32, #tpu.memory_space<vmem>>, %arg2: memref<16x64xf32, #tpu.memory_space<vmem>>, %arg3: memref<64x256xf32, #tpu.memory_space<vmem>>, %arg4: memref<9x512xf32, #tpu.memory_space<vmem>>, %arg5: memref<8x72xf32, #tpu.memory_space<vmem>>, %arg6: memref<8x1xf32, #tpu.memory_space<vmem>>, %arg7: memref<8x72xf32, #tpu.memory_space<vmem>>, %arg8: memref<8x1xf32, #tpu.memory_space<vmem>>, %arg9: memref<8x512xf32, #tpu.memory_space<vmem>>, %arg10: memref<72x512xf32, #tpu.memory_space<vmem>>, %arg11: memref<72x512xf32, #tpu.memory_space<vmem>>) attributes {dimension_semantics = [#tpu.dimension_semantics<arbitrary>], iteration_bounds = array<i64: 1>, scalar_prefetch = 0 : i64, scratch_operands = 2 : i64, tpu.core_type = #tpu.core_type<tc>, window_params = [{pipeline_mode = #tpu.pipeline_mode<synchronous>, transform_indices = @transform_0, window_bounds = array<i64: 8, 512>}, {pipeline_mode = #tpu.pipeline_mode<synchronous>, transform_indices = @transform_1, window_bounds = array<i64: 16, 64>}, {pipeline_mode = #tpu.pipeline_mode<synchronous>, transform_indices = @transform_2, window_bounds = array<i64: 64, 256>}, {pipeline_mode = #tpu.pipeline_mode<synchronous>, transform_indices = @transform_3, window_bounds = array<i64: 9, 512>}, {pipeline_mode = #tpu.pipeline_mode<synchronous>, transform_indices = @transform_4, window_bounds = array<i64: 8, 72>}, {pipeline_mode = #tpu.pipeline_mode<synchronous>, transform_indices = @transform_5, window_bounds = array<i64: 8, 1>}, {pipeline_mode = #tpu.pipeline_mode<synchronous>, transform_indices = @transform_6, window_bounds = array<i64: 8, 72>}, {pipeline_mode = #tpu.pipeline_mode<synchronous>, transform_indices = @transform_7, window_bounds = array<i64: 8, 1>}, {pipeline_mode = #tpu.pipeline_mode<synchronous>, transform_indices = @transform_8, window_bounds = array<i64: 8, 512>}]} {
    %c0 = arith.constant 0 : index
    %c0_0 = arith.constant 0 : index
    %0 = vector.load %arg2[%c0, %c0_0] : memref<16x64xf32, #tpu.memory_space<vmem>>, vector<16x64xf32>
    %c0_1 = arith.constant 0 : index
    %c0_2 = arith.constant 0 : index
    %1 = vector.load %arg3[%c0_1, %c0_2] : memref<64x256xf32, #tpu.memory_space<vmem>>, vector<64x256xf32>
    %cst = arith.constant dense<0.000000e+00> : vector<16x256xf32>
    %2 = tpu.matmul %0, %1, %cst {dimension_numbers = #tpu.dot_dimension_numbers<[1], [0], [0], [1], [0, 0, 1, 1], [], []>} : vector<16x64xf32>, vector<64x256xf32>, vector<16x256xf32> -> vector<16x256xf32>
    %c0_3 = arith.constant 0 : index
    %c0_4 = arith.constant 0 : index
    %3 = vector.load %arg1[%c0_3, %c0_4] : memref<8x512xf32, #tpu.memory_space<vmem>>, vector<8x256xf32>
    %4 = vector.extract_strided_slice %2 {offsets = [0, 0], sizes = [8, 256], strides = [1, 1]} : vector<16x256xf32> to vector<8x256xf32>
    %5 = arith.addf %3, %4 : vector<8x256xf32>
    %c0_5 = arith.constant 0 : index
    %c256 = arith.constant 256 : index
    %6 = vector.load %arg1[%c0_5, %c256] : memref<8x512xf32, #tpu.memory_space<vmem>>, vector<8x256xf32>
    %7 = vector.extract_strided_slice %2 {offsets = [8, 0], sizes = [8, 256], strides = [1, 1]} : vector<16x256xf32> to vector<8x256xf32>
    %8 = arith.addf %6, %7 : vector<8x256xf32>
    %9 = tpu.concatenate %5, %8 in 1 : vector<8x256xf32>, vector<8x256xf32> -> vector<8x512xf32>
    %c17_i32 = arith.constant 17 : i32
    %10 = tpu.dynamic_rotate %9 by %c17_i32 dim 1 : vector<8x512xf32>, i32 -> vector<8x512xf32>
    %c0_6 = arith.constant 0 : index
    %c0_7 = arith.constant 0 : index
    %11 = vector.load %arg4[%c0_6, %c0_7] : memref<9x512xf32, #tpu.memory_space<vmem>>, vector<1x512xf32>
    %12 = vector.broadcast %11 : vector<1x512xf32> to vector<8x512xf32>
    %13 = arith.mulf %10, %12 : vector<8x512xf32>
    %c0_8 = arith.constant 0 : index
    %c0_9 = arith.constant 0 : index
    %14 = vector.load %arg10[%c0_8, %c0_9] : memref<72x512xf32, #tpu.memory_space<vmem>>, vector<8x512xf32>
    tpu.vector_store %arg10[%c0_8, %c0_9], %13 {strides = array<i32>} : memref<72x512xf32, #tpu.memory_space<vmem>>, vector<8x512xf32>,
    %c16_i32 = arith.constant 16 : i32
    %15 = tpu.dynamic_rotate %9 by %c16_i32 dim 1 : vector<8x512xf32>, i32 -> vector<8x512xf32>
    %c1 = arith.constant 1 : index
    %c0_10 = arith.constant 0 : index
    %16 = vector.load %arg4[%c1, %c0_10] : memref<9x512xf32, #tpu.memory_space<vmem>>, vector<1x512xf32>
    %17 = vector.broadcast %16 : vector<1x512xf32> to vector<8x512xf32>
    %18 = arith.mulf %15, %17 : vector<8x512xf32>
    %c8 = arith.constant 8 : index
    %c0_11 = arith.constant 0 : index
    %19 = vector.load %arg10[%c8, %c0_11] : memref<72x512xf32, #tpu.memory_space<vmem>>, vector<8x512xf32>
    tpu.vector_store %arg10[%c8, %c0_11], %18 {strides = array<i32>} : memref<72x512xf32, #tpu.memory_space<vmem>>, vector<8x512xf32>,
    %c15_i32 = arith.constant 15 : i32
    %20 = tpu.dynamic_rotate %9 by %c15_i32 dim 1 : vector<8x512xf32>, i32 -> vector<8x512xf32>
    %c2 = arith.constant 2 : index
    %c0_12 = arith.constant 0 : index
    %21 = vector.load %arg4[%c2, %c0_12] : memref<9x512xf32, #tpu.memory_space<vmem>>, vector<1x512xf32>
    %22 = vector.broadcast %21 : vector<1x512xf32> to vector<8x512xf32>
    %23 = arith.mulf %20, %22 : vector<8x512xf32>
    %c16 = arith.constant 16 : index
    %c0_13 = arith.constant 0 : index
    %24 = vector.load %arg10[%c16, %c0_13] : memref<72x512xf32, #tpu.memory_space<vmem>>, vector<8x512xf32>
    tpu.vector_store %arg10[%c16, %c0_13], %23 {strides = array<i32>} : memref<72x512xf32, #tpu.memory_space<vmem>>, vector<8x512xf32>,
    %c1_i32 = arith.constant 1 : i32
    %25 = tpu.dynamic_rotate %9 by %c1_i32 dim 1 : vector<8x512xf32>, i32 -> vector<8x512xf32>
    %c3 = arith.constant 3 : index
    %c0_14 = arith.constant 0 : index
    %26 = vector.load %arg4[%c3, %c0_14] : memref<9x512xf32, #tpu.memory_space<vmem>>, vector<1x512xf32>
    %27 = vector.broadcast %26 : vector<1x512xf32> to vector<8x512xf32>
    %28 = arith.mulf %25, %27 : vector<8x512xf32>
    %c24 = arith.constant 24 : index
    %c0_15 = arith.constant 0 : index
    %29 = vector.load %arg10[%c24, %c0_15] : memref<72x512xf32, #tpu.memory_space<vmem>>, vector<8x512xf32>
    tpu.vector_store %arg10[%c24, %c0_15], %28 {strides = array<i32>} : memref<72x512xf32, #tpu.memory_space<vmem>>, vector<8x512xf32>,
    %c4 = arith.constant 4 : index
    %c0_16 = arith.constant 0 : index
    %30 = vector.load %arg4[%c4, %c0_16] : memref<9x512xf32, #tpu.memory_space<vmem>>, vector<1x512xf32>
    %31 = vector.broadcast %30 : vector<1x512xf32> to vector<8x512xf32>
    %32 = arith.mulf %9, %31 : vector<8x512xf32>
    %c32 = arith.constant 32 : index
    %c0_17 = arith.constant 0 : index
    %33 = vector.load %arg10[%c32, %c0_17] : memref<72x512xf32, #tpu.memory_space<vmem>>, vector<8x512xf32>
    tpu.vector_store %arg10[%c32, %c0_17], %32 {strides = array<i32>} : memref<72x512xf32, #tpu.memory_space<vmem>>, vector<8x512xf32>,
    %c511_i32 = arith.constant 511 : i32
    %34 = tpu.dynamic_rotate %9 by %c511_i32 dim 1 : vector<8x512xf32>, i32 -> vector<8x512xf32>
    %c5 = arith.constant 5 : index
    %c0_18 = arith.constant 0 : index
    %35 = vector.load %arg4[%c5, %c0_18] : memref<9x512xf32, #tpu.memory_space<vmem>>, vector<1x512xf32>
    %36 = vector.broadcast %35 : vector<1x512xf32> to vector<8x512xf32>
    %37 = arith.mulf %34, %36 : vector<8x512xf32>
    %c40 = arith.constant 40 : index
    %c0_19 = arith.constant 0 : index
    %38 = vector.load %arg10[%c40, %c0_19] : memref<72x512xf32, #tpu.memory_space<vmem>>, vector<8x512xf32>
    tpu.vector_store %arg10[%c40, %c0_19], %37 {strides = array<i32>} : memref<72x512xf32, #tpu.memory_space<vmem>>, vector<8x512xf32>,
    %c497_i32 = arith.constant 497 : i32
    %39 = tpu.dynamic_rotate %9 by %c497_i32 dim 1 : vector<8x512xf32>, i32 -> vector<8x512xf32>
    %c6 = arith.constant 6 : index
    %c0_20 = arith.constant 0 : index
    %40 = vector.load %arg4[%c6, %c0_20] : memref<9x512xf32, #tpu.memory_space<vmem>>, vector<1x512xf32>
    %41 = vector.broadcast %40 : vector<1x512xf32> to vector<8x512xf32>
    %42 = arith.mulf %39, %41 : vector<8x512xf32>
    %c48 = arith.constant 48 : index
    %c0_21 = arith.constant 0 : index
    %43 = vector.load %arg10[%c48, %c0_21] : memref<72x512xf32, #tpu.memory_space<vmem>>, vector<8x512xf32>
    tpu.vector_store %arg10[%c48, %c0_21], %42 {strides = array<i32>} : memref<72x512xf32, #tpu.memory_space<vmem>>, vector<8x512xf32>,
    %c496_i32 = arith.constant 496 : i32
    %44 = tpu.dynamic_rotate %9 by %c496_i32 dim 1 : vector<8x512xf32>, i32 -> vector<8x512xf32>
    %c7 = arith.constant 7 : index
    %c0_22 = arith.constant 0 : index
    %45 = vector.load %arg4[%c7, %c0_22] : memref<9x512xf32, #tpu.memory_space<vmem>>, vector<1x512xf32>
    %46 = vector.broadcast %45 : vector<1x512xf32> to vector<8x512xf32>
    %47 = arith.mulf %44, %46 : vector<8x512xf32>
    %c56 = arith.constant 56 : index
    %c0_23 = arith.constant 0 : index
    %48 = vector.load %arg10[%c56, %c0_23] : memref<72x512xf32, #tpu.memory_space<vmem>>, vector<8x512xf32>
    tpu.vector_store %arg10[%c56, %c0_23], %47 {strides = array<i32>} : memref<72x512xf32, #tpu.memory_space<vmem>>, vector<8x512xf32>,
    %c495_i32 = arith.constant 495 : i32
    %49 = tpu.dynamic_rotate %9 by %c495_i32 dim 1 : vector<8x512xf32>, i32 -> vector<8x512xf32>
    %c8_24 = arith.constant 8 : index
    %c0_25 = arith.constant 0 : index
    %50 = vector.load %arg4[%c8_24, %c0_25] : memref<9x512xf32, #tpu.memory_space<vmem>>, vector<1x512xf32>
    %51 = vector.broadcast %50 : vector<1x512xf32> to vector<8x512xf32>
    %52 = arith.mulf %49, %51 : vector<8x512xf32>
    %c64 = arith.constant 64 : index
    %c0_26 = arith.constant 0 : index
    %53 = vector.load %arg10[%c64, %c0_26] : memref<72x512xf32, #tpu.memory_space<vmem>>, vector<8x512xf32>
    tpu.vector_store %arg10[%c64, %c0_26], %52 {strides = array<i32>} : memref<72x512xf32, #tpu.memory_space<vmem>>, vector<8x512xf32>,
    %c0_27 = arith.constant 0 : index
    %c0_28 = arith.constant 0 : index
    %54 = vector.load %arg5[%c0_27, %c0_28] : memref<8x72xf32, #tpu.memory_space<vmem>>, vector<8x72xf32>
    %c0_29 = arith.constant 0 : index
    %c0_30 = arith.constant 0 : index
    %55 = vector.load %arg10[%c0_29, %c0_30] : memref<72x512xf32, #tpu.memory_space<vmem>>, vector<72x512xf32>
    %cst_31 = arith.constant dense<0.000000e+00> : vector<8x512xf32>
    %56 = tpu.matmul %54, %55, %cst_31 {dimension_numbers = #tpu.dot_dimension_numbers<[1], [0], [0], [1], [0, 0, 1, 1], [], []>} : vector<8x72xf32>, vector<72x512xf32>, vector<8x512xf32> -> vector<8x512xf32>
    %c0_32 = arith.constant 0 : index
    %c0_33 = arith.constant 0 : index
    %57 = vector.load %arg6[%c0_32, %c0_33] : memref<8x1xf32, #tpu.memory_space<vmem>>, vector<8x1xf32>
    %58 = vector.broadcast %57 : vector<8x1xf32> to vector<8x512xf32>
    %59 = arith.addf %56, %58 : vector<8x512xf32>
    %cst_34 = arith.constant 2.000000e-01 : f32
    %60 = vector.broadcast %cst_34 : f32 to vector<8x512xf32>
    %61 = arith.mulf %60, %59 : vector<8x512xf32>
    %62 = arith.maximumf %59, %61 : vector<8x512xf32>
    %c17_i32_35 = arith.constant 17 : i32
    %63 = tpu.dynamic_rotate %62 by %c17_i32_35 dim 1 : vector<8x512xf32>, i32 -> vector<8x512xf32>
    %c0_36 = arith.constant 0 : index
    %c0_37 = arith.constant 0 : index
    %64 = vector.load %arg4[%c0_36, %c0_37] : memref<9x512xf32, #tpu.memory_space<vmem>>, vector<1x512xf32>
    %65 = vector.broadcast %64 : vector<1x512xf32> to vector<8x512xf32>
    %66 = arith.mulf %63, %65 : vector<8x512xf32>
    %c0_38 = arith.constant 0 : index
    %c0_39 = arith.constant 0 : index
    %67 = vector.load %arg11[%c0_38, %c0_39] : memref<72x512xf32, #tpu.memory_space<vmem>>, vector<8x512xf32>
    tpu.vector_store %arg11[%c0_38, %c0_39], %66 {strides = array<i32>} : memref<72x512xf32, #tpu.memory_space<vmem>>, vector<8x512xf32>,
    %c16_i32_40 = arith.constant 16 : i32
    %68 = tpu.dynamic_rotate %62 by %c16_i32_40 dim 1 : vector<8x512xf32>, i32 -> vector<8x512xf32>
    %c1_41 = arith.constant 1 : index
    %c0_42 = arith.constant 0 : index
    %69 = vector.load %arg4[%c1_41, %c0_42] : memref<9x512xf32, #tpu.memory_space<vmem>>, vector<1x512xf32>
    %70 = vector.broadcast %69 : vector<1x512xf32> to vector<8x512xf32>
    %71 = arith.mulf %68, %70 : vector<8x512xf32>
    %c8_43 = arith.constant 8 : index
    %c0_44 = arith.constant 0 : index
    %72 = vector.load %arg11[%c8_43, %c0_44] : memref<72x512xf32, #tpu.memory_space<vmem>>, vector<8x512xf32>
    tpu.vector_store %arg11[%c8_43, %c0_44], %71 {strides = array<i32>} : memref<72x512xf32, #tpu.memory_space<vmem>>, vector<8x512xf32>,
    %c15_i32_45 = arith.constant 15 : i32
    %73 = tpu.dynamic_rotate %62 by %c15_i32_45 dim 1 : vector<8x512xf32>, i32 -> vector<8x512xf32>
    %c2_46 = arith.constant 2 : index
    %c0_47 = arith.constant 0 : index
    %74 = vector.load %arg4[%c2_46, %c0_47] : memref<9x512xf32, #tpu.memory_space<vmem>>, vector<1x512xf32>
    %75 = vector.broadcast %74 : vector<1x512xf32> to vector<8x512xf32>
    %76 = arith.mulf %73, %75 : vector<8x512xf32>
    %c16_48 = arith.constant 16 : index
    %c0_49 = arith.constant 0 : index
    %77 = vector.load %arg11[%c16_48, %c0_49] : memref<72x512xf32, #tpu.memory_space<vmem>>, vector<8x512xf32>
    tpu.vector_store %arg11[%c16_48, %c0_49], %76 {strides = array<i32>} : memref<72x512xf32, #tpu.memory_space<vmem>>, vector<8x512xf32>,
    %c1_i32_50 = arith.constant 1 : i32
    %78 = tpu.dynamic_rotate %62 by %c1_i32_50 dim 1 : vector<8x512xf32>, i32 -> vector<8x512xf32>
    %c3_51 = arith.constant 3 : index
    %c0_52 = arith.constant 0 : index
    %79 = vector.load %arg4[%c3_51, %c0_52] : memref<9x512xf32, #tpu.memory_space<vmem>>, vector<1x512xf32>
    %80 = vector.broadcast %79 : vector<1x512xf32> to vector<8x512xf32>
    %81 = arith.mulf %78, %80 : vector<8x512xf32>
    %c24_53 = arith.constant 24 : index
    %c0_54 = arith.constant 0 : index
    %82 = vector.load %arg11[%c24_53, %c0_54] : memref<72x512xf32, #tpu.memory_space<vmem>>, vector<8x512xf32>
    tpu.vector_store %arg11[%c24_53, %c0_54], %81 {strides = array<i32>} : memref<72x512xf32, #tpu.memory_space<vmem>>, vector<8x512xf32>,
    %c4_55 = arith.constant 4 : index
    %c0_56 = arith.constant 0 : index
    %83 = vector.load %arg4[%c4_55, %c0_56] : memref<9x512xf32, #tpu.memory_space<vmem>>, vector<1x512xf32>
    %84 = vector.broadcast %83 : vector<1x512xf32> to vector<8x512xf32>
    %85 = arith.mulf %62, %84 : vector<8x512xf32>
    %c32_57 = arith.constant 32 : index
    %c0_58 = arith.constant 0 : index
    %86 = vector.load %arg11[%c32_57, %c0_58] : memref<72x512xf32, #tpu.memory_space<vmem>>, vector<8x512xf32>
    tpu.vector_store %arg11[%c32_57, %c0_58], %85 {strides = array<i32>} : memref<72x512xf32, #tpu.memory_space<vmem>>, vector<8x512xf32>,
    %c511_i32_59 = arith.constant 511 : i32
    %87 = tpu.dynamic_rotate %62 by %c511_i32_59 dim 1 : vector<8x512xf32>, i32 -> vector<8x512xf32>
    %c5_60 = arith.constant 5 : index
    %c0_61 = arith.constant 0 : index
    %88 = vector.load %arg4[%c5_60, %c0_61] : memref<9x512xf32, #tpu.memory_space<vmem>>, vector<1x512xf32>
    %89 = vector.broadcast %88 : vector<1x512xf32> to vector<8x512xf32>
    %90 = arith.mulf %87, %89 : vector<8x512xf32>
    %c40_62 = arith.constant 40 : index
    %c0_63 = arith.constant 0 : index
    %91 = vector.load %arg11[%c40_62, %c0_63] : memref<72x512xf32, #tpu.memory_space<vmem>>, vector<8x512xf32>
    tpu.vector_store %arg11[%c40_62, %c0_63], %90 {strides = array<i32>} : memref<72x512xf32, #tpu.memory_space<vmem>>, vector<8x512xf32>,
    %c497_i32_64 = arith.constant 497 : i32
    %92 = tpu.dynamic_rotate %62 by %c497_i32_64 dim 1 : vector<8x512xf32>, i32 -> vector<8x512xf32>
    %c6_65 = arith.constant 6 : index
    %c0_66 = arith.constant 0 : index
    %93 = vector.load %arg4[%c6_65, %c0_66] : memref<9x512xf32, #tpu.memory_space<vmem>>, vector<1x512xf32>
    %94 = vector.broadcast %93 : vector<1x512xf32> to vector<8x512xf32>
    %95 = arith.mulf %92, %94 : vector<8x512xf32>
    %c48_67 = arith.constant 48 : index
    %c0_68 = arith.constant 0 : index
    %96 = vector.load %arg11[%c48_67, %c0_68] : memref<72x512xf32, #tpu.memory_space<vmem>>, vector<8x512xf32>
    tpu.vector_store %arg11[%c48_67, %c0_68], %95 {strides = array<i32>} : memref<72x512xf32, #tpu.memory_space<vmem>>, vector<8x512xf32>,
    %c496_i32_69 = arith.constant 496 : i32
    %97 = tpu.dynamic_rotate %62 by %c496_i32_69 dim 1 : vector<8x512xf32>, i32 -> vector<8x512xf32>
    %c7_70 = arith.constant 7 : index
    %c0_71 = arith.constant 0 : index
    %98 = vector.load %arg4[%c7_70, %c0_71] : memref<9x512xf32, #tpu.memory_space<vmem>>, vector<1x512xf32>
    %99 = vector.broadcast %98 : vector<1x512xf32> to vector<8x512xf32>
    %100 = arith.mulf %97, %99 : vector<8x512xf32>
    %c56_72 = arith.constant 56 : index
    %c0_73 = arith.constant 0 : index
    %101 = vector.load %arg11[%c56_72, %c0_73] : memref<72x512xf32, #tpu.memory_space<vmem>>, vector<8x512xf32>
    tpu.vector_store %arg11[%c56_72, %c0_73], %100 {strides = array<i32>} : memref<72x512xf32, #tpu.memory_space<vmem>>, vector<8x512xf32>,
    %c495_i32_74 = arith.constant 495 : i32
    %102 = tpu.dynamic_rotate %62 by %c495_i32_74 dim 1 : vector<8x512xf32>, i32 -> vector<8x512xf32>
    %c8_75 = arith.constant 8 : index
    %c0_76 = arith.constant 0 : index
    %103 = vector.load %arg4[%c8_75, %c0_76] : memref<9x512xf32, #tpu.memory_space<vmem>>, vector<1x512xf32>
    %104 = vector.broadcast %103 : vector<1x512xf32> to vector<8x512xf32>
    %105 = arith.mulf %102, %104 : vector<8x512xf32>
    %c64_77 = arith.constant 64 : index
    %c0_78 = arith.constant 0 : index
    %106 = vector.load %arg11[%c64_77, %c0_78] : memref<72x512xf32, #tpu.memory_space<vmem>>, vector<8x512xf32>
    tpu.vector_store %arg11[%c64_77, %c0_78], %105 {strides = array<i32>} : memref<72x512xf32, #tpu.memory_space<vmem>>, vector<8x512xf32>,
    %c0_79 = arith.constant 0 : index
    %c0_80 = arith.constant 0 : index
    %107 = vector.load %arg7[%c0_79, %c0_80] : memref<8x72xf32, #tpu.memory_space<vmem>>, vector<8x72xf32>
    %c0_81 = arith.constant 0 : index
    %c0_82 = arith.constant 0 : index
    %108 = vector.load %arg11[%c0_81, %c0_82] : memref<72x512xf32, #tpu.memory_space<vmem>>, vector<72x512xf32>
    %cst_83 = arith.constant dense<0.000000e+00> : vector<8x512xf32>
    %109 = tpu.matmul %107, %108, %cst_83 {dimension_numbers = #tpu.dot_dimension_numbers<[1], [0], [0], [1], [0, 0, 1, 1], [], []>} : vector<8x72xf32>, vector<72x512xf32>, vector<8x512xf32> -> vector<8x512xf32>
    %c0_84 = arith.constant 0 : index
    %c0_85 = arith.constant 0 : index
    %110 = vector.load %arg8[%c0_84, %c0_85] : memref<8x1xf32, #tpu.memory_space<vmem>>, vector<8x1xf32>
    %111 = vector.broadcast %110 : vector<8x1xf32> to vector<8x512xf32>
    %112 = arith.addf %109, %111 : vector<8x512xf32>
    %cst_86 = arith.constant 2.000000e-01 : f32
    %113 = vector.broadcast %cst_86 : f32 to vector<8x512xf32>
    %114 = arith.mulf %113, %112 : vector<8x512xf32>
    %115 = arith.maximumf %112, %114 : vector<8x512xf32>
    %c0_87 = arith.constant 0 : index
    %c0_88 = arith.constant 0 : index
    %116 = vector.load %arg9[%c0_87, %c0_88] : memref<8x512xf32, #tpu.memory_space<vmem>>, vector<8x512xf32>
    tpu.vector_store %arg9[%c0_87, %c0_88], %115 {strides = array<i32>} : memref<8x512xf32, #tpu.memory_space<vmem>>, vector<8x512xf32>,
    return
  }
  func.func @transform_0(%arg0: i32) -> (i32, i32) {
    %c0_i32 = arith.constant 0 : i32
    %c0_i32_0 = arith.constant 0 : i32
    %c0_i32_1 = arith.constant 0 : i32
    return %c0_i32, %c0_i32_0 : i32, i32
  }
  func.func @transform_1(%arg0: i32) -> (i32, i32) {
    %c0_i32 = arith.constant 0 : i32
    %c0_i32_0 = arith.constant 0 : i32
    %c0_i32_1 = arith.constant 0 : i32
    return %c0_i32, %c0_i32_0 : i32, i32
  }
  func.func @transform_2(%arg0: i32) -> (i32, i32) {
    %c0_i32 = arith.constant 0 : i32
    %c0_i32_0 = arith.constant 0 : i32
    %c0_i32_1 = arith.constant 0 : i32
    return %c0_i32, %c0_i32_0 : i32, i32
  }
  func.func @transform_3(%arg0: i32) -> (i32, i32) {
    %c0_i32 = arith.constant 0 : i32
    %c0_i32_0 = arith.constant 0 : i32
    %c0_i32_1 = arith.constant 0 : i32
    return %c0_i32, %c0_i32_0 : i32, i32
  }
  func.func @transform_4(%arg0: i32) -> (i32, i32) {
    %c0_i32 = arith.constant 0 : i32
    %c0_i32_0 = arith.constant 0 : i32
    %c0_i32_1 = arith.constant 0 : i32
    return %c0_i32, %c0_i32_0 : i32, i32
  }
  func.func @transform_5(%arg0: i32) -> (i32, i32) {
    %c0_i32 = arith.constant 0 : i32
    %c0_i32_0 = arith.constant 0 : i32
    %c0_i32_1 = arith.constant 0 : i32
    return %c0_i32, %c0_i32_0 : i32, i32
  }
  func.func @transform_6(%arg0: i32) -> (i32, i32) {
    %c0_i32 = arith.constant 0 : i32
    %c0_i32_0 = arith.constant 0 : i32
    %c0_i32_1 = arith.constant 0 : i32
    return %c0_i32, %c0_i32_0 : i32, i32
  }
  func.func @transform_7(%arg0: i32) -> (i32, i32) {
    %c0_i32 = arith.constant 0 : i32
    %c0_i32_0 = arith.constant 0 : i32
    %c0_i32_1 = arith.constant 0 : i32
    return %c0_i32, %c0_i32_0 : i32, i32
  }
  func.func @transform_8(%arg0: i32) -> (i32, i32) {
    %c0_i32 = arith.constant 0 : i32
    %c0_i32_0 = arith.constant 0 : i32
    %c0_i32_1 = arith.constant 0 : i32
    return %c0_i32, %c0_i32_0 : i32, i32
  }
}

</mosaic_0001>

<bundles_post_ra>
// kernel: up_forward.1
= control target key start
LH: loop header
LB: loop body
LE: loop exit
PB: predicated region body
PF: predicated region fallthrough
CT: control target
= control target key end

     0   :  { %v1403_v3 = vmov 0.0   ;;  %vm47_vm0 = vcmask 523264   ;;  %s1404_s22 = smov 17   ;;  %s1406_s23 = smov 15   ;;  %v1411_v39 = vmov 0   ;;  %v147_v49 = vlaneseq  ;;  %s2138_s2 = inlined_call_operand.vmem [shape: f32[64,256], index: 2, kind: input, shape index: {}]   ;;  %s2139_s1 = inlined_call_operand.vmem [shape: f32[16,64], index: 1, kind: input, shape index: {}]   ;;  %s2140_s0 = inlined_call_operand.vmem [shape: f32[8,512], index: 0, kind: input, shape index: {}]   ;;  %s2141_s5 = inlined_call_operand.vmem [shape: f32[8,1], index: 5, kind: input, shape index: {}]   ;;  %s2142_s3 = inlined_call_operand.vmem [shape: f32[9,512], index: 3, kind: input, shape index: {}]   ;;  %s2143_s4 = inlined_call_operand.vmem [shape: f32[8,72], index: 4, kind: input, shape index: {}]   ;;  %s2144_s7 = inlined_call_operand.vmem [shape: f32[8,1], index: 7, kind: input, shape index: {}]   ;;  %s2145_s6 = inlined_call_operand.vmem [shape: f32[8,72], index: 6, kind: input, shape index: {}]   ;;  %s2146_s8 = inlined_call_operand.vmem [shape: f32[8,512], index: 8, kind: output, shape index: {}]  }
   0x1   :  { %v32_v0 = vld [vmem:[%s2138_s2 + $0x8] sm:$0xff]  ;;  %v34_v1 = vld [vmem:[%s2138_s2 + $0x18] sm:$0xff]  ;;  %v31_v2 = vld [vmem:[%s2138_s2] sm:$0xff]  ;;  %118 = vmatprep.mubr.f32.mxu0 %v1403_v3  ;;  %634 = vmatprep.mubr.f32.mxu1 %v1403_v3  ;;  %s1407_s24 = smov 1   ;;  %s1408_s25 = smov 127   ;;  %vm566_vm9 = vcmask 588800  }
   0x2   :  { %v1312_v4 = vpack.c.bf16 %v34_v1, %v32_v0  ;;  %v33_v5 = vld [vmem:[%s2138_s2 + $0x10] sm:$0xff]  ;;  %v36_v6 = vld [vmem:[%s2138_s2 + $0x28] sm:$0xff]  ;;  %v38_v7 = vld [vmem:[%s2138_s2 + $0x38] sm:$0xff]  ;;  %s1409_s26 = smov 113   ;;  %s1410_s29 = smov 112   ;;  %1402 = vset.pattern.permute.xlu0 %v1411_v39  ;;  %v157_v52 = vshrl.u32 %v147_v49, 7 }
   0x3   :  { %v1314_v8 = vpack.c.bf16 %v33_v5, %v31_v2  ;;  %v1316_v9 = vpack.c.bf16 %v38_v7, %v36_v6  ;;  %v35_v10 = vld [vmem:[%s2138_s2 + $0x20] sm:$0xff]  ;;  %v37_v11 = vld [vmem:[%s2138_s2 + $0x30] sm:$0xff]  ;;  %v40_v12 = vld [vmem:[%s2138_s2 + $0x48] sm:$0xff]  ;;  %v1617_v53 = vand.u32 127, %v147_v49 }
   0x4   :  { %1313 = vmatprep.subr.bf16.mxu0 %v1312_v4  ;;  %v42_v13 = vld [vmem:[%s2138_s2 + $0x58] sm:$0xff]  ;;  %v1318_v14 = vpack.c.bf16 %v37_v11, %v35_v10  ;;  %v39_v16 = vld [vmem:[%s2138_s2 + $0x40] sm:$0xff]  ;;  %v41_v17 = vld [vmem:[%s2138_s2 + $0x50] sm:$0xff]  ;;  %v1623_v56 = vsub.s32 0, %v157_v52  ;;  %v1631_v59 = vsub.s32 1, %v157_v52  ;;  %v1658_v6 = vsub.s32 2, %v157_v52 }
   0x5   :  { %1315 = vmatpush1.bf16.msra.mxu0 %v1314_v8  ;;  %v1320_v15 = vpack.c.bf16 %v42_v13, %v40_v12  ;;  %v44_v18 = vld [vmem:[%s2138_s2 + $0x68] sm:$0xff]  ;;  %v46_v19 = vld [vmem:[%s2138_s2 + $0x78] sm:$0xff]  ;;  %v1322_v20 = vpack.c.bf16 %v41_v17, %v39_v16  ;;  %v43_v22 = vld [vmem:[%s2138_s2 + $0x60] sm:$0xff]  ;;  %vm192_vm1 = vcmp.lt.s32.totalorder %v1617_v53, 16  ;;  %vm149_vm2 = vcmp.lt.s32.totalorder %v1617_v53, 17 }
   0x6   :  { %1317 = vmatprep.subr.bf16.mxu0 %v1316_v9  ;;  %v1324_v21 = vpack.c.bf16 %v46_v19, %v44_v18  ;;  %v45_v23 = vld [vmem:[%s2138_s2 + $0x70] sm:$0xff]  ;;  %v29_v25 = vld [vmem:[%s2139_s1] sm:$0xff]  ;;  %v30_v26 = vld [vmem:[%s2139_s1 + $0x8] sm:$0xff]  ;;  %s1405_s1 = smov 16   ;;  %v1660_v7 = vsub.s32 3, %v157_v52  ;;  %vm280_vm3 = vcmp.lt.s32.totalorder %v1617_v53, 1 }
   0x7   :  { %v1326_v24 = vpack.c.bf16 %v45_v23, %v43_v22  ;;  %v131_v27 = vld [vmem:[%s2140_s0] sm:$0xff]  ;;  %v132_v28 = vld [vmem:[%s2140_s0 + $0x8] sm:$0xff]  ;;  %v135_v35 = vld [vmem:[%s2140_s0 + $0x10] sm:$0xff]  ;;  %vm236_vm4 = vcmp.lt.s32.totalorder %v1617_v53, 15  ;;  %vm355_vm5 = vcmp.lt.s32.totalorder %v1617_v53, 127  ;;  %vm399_vm6 = vcmp.lt.s32.totalorder %v1617_v53, 113 }
   0x8   :  { %v136_v37 = vld [vmem:[%s2140_s0 + $0x18] sm:$0xff]  ;;  %s1412_s0 = smov 111   ;;  %v560_v40 = vld [vmem:[%s2141_s5] sm:$0xff]  ;;  %vm443_vm7 = vcmp.lt.s32.totalorder %v1617_v53, 112  ;;  %vm487_vm8 = vcmp.lt.s32.totalorder %v1617_v53, 111 }
   0x9   :  { %1319 = vmatpush1.bf16.msra.mxu0 %v1318_v14  ;;  %v154_v57 = vld [vmem:[%s2142_s3] ss:$8 sm:$0xf]  ;;  %v1292_v58 = vld [vmem:[%s2142_s3 + $0x1] ss:$8 sm:$0xf] }
   0xa   :  { %1321 = vmatprep.subr.bf16.mxu0 %v1320_v15  ;;  %v1639_v61 = vld [vmem:[%s2142_s3 + $0x4] ss:$8 sm:$0xf]  ;;  %v1644_v62 = vld [vmem:[%s2142_s3 + $0x2] ss:$8 sm:$0xf]  ;;  %v163_v1 = vrot.slane %v154_v57, %v1631_v59  ;;  %v207_v2 = vrot.slane %v1292_v58, %v1631_v59  ;;  %v159_v14 = vrot.slane %v154_v57, %v1623_v56  ;;  %v211_v15 = vrot.slane %v1292_v58, %v1658_v6 }
   0xb   :  { %v1649_v0 = vld [vmem:[%s2142_s3 + $0x3] ss:$8 sm:$0xf]  ;;  %v322_v5 = vrot.slane %v1639_v61, %v1623_v56  ;;  %v326_v9 = vrot.slane %v1639_v61, %v1631_v59  ;;  %v251_v10 = vrot.slane %v1644_v62, %v1631_v59  ;;  %v171_v19 = vrot.slane %v154_v57, %v1660_v7 }
   0xc   :  { %v295_v11 = vrot.slane %v1649_v0, %v1631_v59  ;;  %v167_v22 = vrot.slane %v154_v57, %v1658_v6 }
   0xd   :  { %1323 = vmatpush1.bf16.msra.mxu0 %v1322_v20  ;;  %v203_v20 = vrot.slane %v1292_v58, %v1623_v56 }
   0xe   :  { %1325 = vmatprep.subr.bf16.mxu0 %v1324_v21  ;;  %v215_v21 = vrot.slane %v1292_v58, %v1660_v7 }
  0x11   :  { %1327 = vmatpush1.bf16.msra.mxu0 %v1326_v24 }
  0x14   :  { %1290 = vmatmul.mubr.msk.f32.vlgmr.msra.gmra.mrb[0].mxu0 %vm47_vm0, %v29_v25 }
  0x15   :  { %124 = vmatprep.mubr.f32.mxu0 %v1403_v3 }
  0x18   :  { %1291 = vmatmul.mubr.msk.f32.gmra.mrb[2].mxu0 %vm47_vm0, %v30_v26 }
  0x19   :  { %705 = vmatprep.mubr.f32.mxu0 %v1403_v3 }
  0xe7   :  { %v120_v29 = vpop.f32.mrb[0].mxu0 }
  0xe8   :  { %v1522_v30 = vadd.f32 %v131_v27, %v120_v29  ;;  %v122_v31 = vpop.f32.mrb[1].mxu0 }
  0xe9   :  { %v1524_v32 = vadd.f32 %v132_v28, %v122_v31 }
  0xea   :  { %139 = vrot.lane.b32.xlu0 %v1522_v30, %s1404_s22 }
  0xeb   :  { %186 = vrot.lane.b32.xlu1 %v1524_v32, %s1405_s1  ;;  %v126_v33 = vpop.f32.mrb[2].mxu0 }
  0xec   :  { %v128_v34 = vpop.f32.mrb[3].mxu0  ;;  %v1553_v36 = vadd.f32 %v135_v35, %v126_v33  ;;  %v330_v33 = vrot.slane %v1639_v61, %v1658_v6  ;;  %v1699_v35 = vld [vmem:[%s2142_s3 + $0x5] ss:$8 sm:$0xf] }
  0xed   :  { %v1560_v38 = vadd.f32 %v136_v37, %v128_v34 }
  0xee   :  { %184 = vrot.lane.b32.xlu0 %v1522_v30, %s1405_s1 }
  0xef   :  { %230 = vrot.lane.b32.xlu1 %v1524_v32, %s1406_s23 }
  0xf2   :  { %228 = vrot.lane.b32.xlu0 %v1522_v30, %s1406_s23 }
  0xf3   :  { %274 = vrot.lane.b32.xlu1 %v1524_v32, %s1407_s24 }
  0xf6   :  { %272 = vrot.lane.b32.xlu0 %v1522_v30, %s1407_s24 }
  0xf7   :  { %349 = vrot.lane.b32.xlu1 %v1524_v32, %s1408_s25 }
  0xfa   :  { %347 = vrot.lane.b32.xlu0 %v1522_v30, %s1408_s25 }
  0xfb   :  { %393 = vrot.lane.b32.xlu1 %v1524_v32, %s1409_s26 }
  0xfe   :  { %391 = vrot.lane.b32.xlu0 %v1522_v30, %s1409_s26 }
  0xff   :  { %437 = vrot.lane.b32.xlu1 %v1524_v32, %s1410_s29 }
 0x102   :  { %435 = vrot.lane.b32.xlu0 %v1522_v30, %s1410_s29 }
 0x103   :  { %143 = vrot.lane.b32.xlu1 %v1553_v36, %s1404_s22 }
 0x106   :  { %141 = vrot.lane.b32.xlu0 %v1524_v32, %s1404_s22 }
 0x107   :  { %145 = vrot.lane.b32.xlu1 %v1560_v38, %s1404_s22 }
 0x10a   :  { %188 = vrot.lane.b32.xlu0 %v1553_v36, %s1405_s1 }
 0x10b   :  { %190 = vrot.lane.b32.xlu1 %v1560_v38, %s1405_s1 }
 0x10e   :  { %232 = vrot.lane.b32.xlu0 %v1553_v36, %s1406_s23 }
 0x10f   :  { %234 = vrot.lane.b32.xlu1 %v1560_v38, %s1406_s23 }
 0x112   :  { %276 = vrot.lane.b32.xlu0 %v1553_v36, %s1407_s24 }
 0x113   :  { %278 = vrot.lane.b32.xlu1 %v1560_v38, %s1407_s24 }
 0x116   :  { %351 = vrot.lane.b32.xlu0 %v1553_v36, %s1408_s25 }
 0x117   :  { %353 = vrot.lane.b32.xlu1 %v1560_v38, %s1408_s25 }
 0x11a   :  { %395 = vrot.lane.b32.xlu0 %v1553_v36, %s1409_s26 }
 0x11b   :  { %397 = vrot.lane.b32.xlu1 %v1560_v38, %s1409_s26 }
 0x11e   :  { %439 = vrot.lane.b32.xlu0 %v1553_v36, %s1410_s29 }
 0x11f   :  { %441 = vrot.lane.b32.xlu1 %v1560_v38, %s1410_s29 }
 0x122   :  { %479 = vrot.lane.b32.xlu0 %v1522_v30, %s1412_s0 }
 0x123   :  { %481 = vrot.lane.b32.xlu1 %v1524_v32, %s1412_s0 }
 0x126   :  { %483 = vrot.lane.b32.xlu0 %v1553_v36, %s1412_s0 }
 0x127   :  { %485 = vrot.lane.b32.xlu1 %v1560_v38, %s1412_s0 }
 0x12a   :  { %563 = vperm.xlu0 %1402, %v560_v40  }
 0x15c   :  { %v140_v41 = vpop.permute.xlu0 %139 }
 0x15d   :  { %v187_v42 = vpop.permute.xlu1 %186 }
 0x160   :  { %v185_v43 = vpop.permute.xlu0 %184 }
 0x161   :  { %v1603_v44 = vpop.permute.xlu1 %230  ;;  %v195_v4 = vsel %vm192_vm1, %v185_v43, %v187_v42 }
 0x162   :  { %v221_v17 = vmul.f32 %v207_v2, %v195_v4  ;;  %v334_v2 = vrot.slane %v1639_v61, %v1660_v7  ;;  %v366_v4 = vrot.slane %v1699_v35, %v1623_v56 }
 0x164   :  { %v1605_v45 = vpop.permute.xlu0 %228 }
 0x165   :  { %v1607_v46 = vpop.permute.xlu1 %274  ;;  %v239_v27 = vsel %vm236_vm4, %v1605_v45, %v1603_v44 }
 0x166   :  { %v265_v57 = vmul.f32 %v251_v10, %v239_v27  ;;  %v247_v10 = vrot.slane %v1644_v62, %v1623_v56 }
 0x168   :  { %v1609_v47 = vpop.permute.xlu0 %272 }
 0x169   :  { %v1611_v48 = vpop.permute.xlu1 %349  ;;  %v283_v18 = vsel %vm280_vm3, %v1609_v47, %v1607_v46 }
 0x16a   :  { %v309_v34 = vmul.f32 %v295_v11, %v283_v18 }
 0x16c   :  { %v1613_v50 = vpop.permute.xlu0 %347 }
 0x16d   :  { %v1615_v51 = vpop.permute.xlu1 %393 }
 0x170   :  { %v1619_v54 = vpop.permute.xlu0 %391 }
 0x171   :  { %v1621_v55 = vpop.permute.xlu1 %437 }
 0x174   :  { %v1634_v60 = vpop.permute.xlu0 %435 }
 0x175   :  { %v144_v63 = vpop.permute.xlu1 %143 }
 0x178   :  { %v142_v8 = vpop.permute.xlu0 %141 }
 0x179   :  { %v152_v12 = vsel %vm149_vm2, %v140_v41, %v142_v8  ;;  %v146_v13 = vpop.permute.xlu1 %145  ;;  %v151_v28 = vsel %vm149_vm2, %v142_v8, %v144_v63 }
 0x17a   :  { %v177_v16 = vmul.f32 %v163_v1, %v152_v12  ;;  %v150_v23 = vsel %vm149_vm2, %v144_v63, %v146_v13  ;;  %v153_v24 = vsel %vm149_vm2, %v146_v13, %v140_v41  ;;  %v178_v58 = vmul.f32 %v167_v22, %v151_v28 }
 0x17b   :  { %v176_v41 = vmul.f32 %v159_v14, %v153_v24  ;;  %v1706_v1 = vmul.f32 %v322_v5, %v1522_v30  ;;  %v1332_v14 = vpack.c.bf16 %v309_v34, %v265_v57  ;;  %v299_v30 = vrot.slane %v1649_v0, %v1658_v6 }
 0x17c   :  { %v189_v25 = vpop.permute.xlu0 %188  ;;  %v1328_v26 = vpack.c.bf16 %v221_v17, %v177_v16  ;;  %v259_v5 = vrot.slane %v1644_v62, %v1660_v7  ;;  %v303_v16 = vrot.slane %v1649_v0, %v1660_v7  ;;  %v374_v22 = vrot.slane %v1699_v35, %v1658_v6 }
 0x17d   :  { %v194_v29 = vsel %vm192_vm1, %v187_v42, %v189_v25  ;;  %v191_v31 = vpop.permute.xlu1 %190  ;;  %v179_v42 = vmul.f32 %v171_v19, %v150_v23  ;;  %v358_v23 = vsel %vm355_vm5, %v1613_v50, %v1611_v48  ;;  %v341_v34 = vmul.f32 %v330_v33, %v1553_v36 }
 0x17e   :  { %v222_v37 = vmul.f32 %v211_v15, %v194_v29  ;;  %v193_v39 = vsel %vm192_vm1, %v189_v25, %v191_v31  ;;  %v196_v40 = vsel %vm192_vm1, %v191_v31, %v185_v43  ;;  %1329 = vmatprep.subr.bf16.mxu1 %v1328_v26  ;;  %v255_v43 = vrot.slane %v1644_v62, %v1658_v6 }
 0x17f   :  { %v220_v49 = vmul.f32 %v203_v20, %v196_v40  ;;  %v223_v52 = vmul.f32 %v215_v21, %v193_v39  ;;  %v291_v15 = vrot.slane %v1649_v0, %v1623_v56  ;;  %v370_v62 = vrot.slane %v1699_v35, %v1631_v59  ;;  %v1298_v39 = vld [vmem:[%s2142_s3 + $0x7] ss:$8 sm:$0xf] }
 0x180   :  { %v233_v63 = vpop.permute.xlu0 %232  ;;  %v1346_v13 = vpack.c.bf16 %v222_v37, %v178_v58  ;;  %v383_v37 = vmul.f32 %v366_v4, %v358_v23  ;;  %v454_v58 = vrot.slane %v1298_v39, %v1623_v56 }
 0x181   :  { %v235_v8 = vpop.permute.xlu1 %234  ;;  %v1330_v11 = vpack.c.bf16 %v220_v49, %v176_v41  ;;  %v1344_v12 = vpack.c.bf16 %v223_v52, %v179_v42  ;;  %v238_v20 = vsel %vm236_vm4, %v1603_v44, %v233_v63 }
 0x182   :  { %v237_v17 = vsel %vm236_vm4, %v233_v63, %v235_v8  ;;  %v240_v18 = vsel %vm236_vm4, %v235_v8, %v1605_v45  ;;  %v378_v45 = vrot.slane %v1699_v35, %v1660_v7  ;;  %v266_v29 = vmul.f32 %v255_v43, %v238_v20 }
 0x183   :  { %1331 = vmatpush1.bf16.msra.mxu1 %v1330_v11  ;;  %1345 = vmatprep.subr.bf16.mxu0 %v1344_v12  ;;  %v264_v25 = vmul.f32 %v247_v10, %v240_v18  ;;  %v267_v26 = vmul.f32 %v259_v5, %v237_v17  ;;  %v340_v35 = vmul.f32 %v326_v9, %v1524_v32 }
 0x184   :  { %1333 = vmatprep.subr.bf16.mxu1 %v1332_v14  ;;  %1347 = vmatpush1.bf16.msra.mxu0 %v1346_v13  ;;  %v277_v19 = vpop.permute.xlu0 %276  ;;  %v1338_v12 = vpack.c.bf16 %v383_v37, %v1706_v1  ;;  %v458_v14 = vrot.slane %v1298_v39, %v1631_v59  ;;  %v466_v5 = vrot.slane %v1298_v39, %v1660_v7 }
 0x185   :  { %v282_v0 = vsel %vm280_vm3, %v1607_v46, %v277_v19  ;;  %v279_v21 = vpop.permute.xlu1 %278 }
 0x186   :  { %v310_v24 = vmul.f32 %v299_v30, %v282_v0  ;;  %v281_v44 = vsel %vm280_vm3, %v277_v19, %v279_v21  ;;  %v284_v46 = vsel %vm280_vm3, %v279_v21, %v1609_v47  ;;  %v1297_v47 = vld [vmem:[%s2142_s3 + $0x6] ss:$8 sm:$0xf]  ;;  %v462_v30 = vrot.slane %v1298_v39, %v1658_v6 }
 0x187   :  { %v308_v27 = vmul.f32 %v291_v15, %v284_v46  ;;  %v311_v28 = vmul.f32 %v303_v16, %v281_v44  ;;  %v410_v57 = vrot.slane %v1297_v47, %v1623_v56  ;;  %v414_v63 = vrot.slane %v1297_v47, %v1631_v59  ;;  %v1299_v46 = vld [vmem:[%s2142_s3 + $0x20] ss:$8 sm:$0xf] }
 0x188   :  { %v352_v31 = vpop.permute.xlu0 %351  ;;  %v1350_v42 = vpack.c.bf16 %v310_v24, %v266_v29  ;;  %v422_v10 = vrot.slane %v1297_v47, %v1660_v7  ;;  %v502_v29 = vrot.slane %v1299_v46, %v1631_v59 }
 0x189   :  { %v357_v40 = vsel %vm355_vm5, %v1611_v48, %v352_v31  ;;  %v354_v41 = vpop.permute.xlu1 %353  ;;  %v1334_v36 = vpack.c.bf16 %v308_v27, %v264_v25  ;;  %v1348_v33 = vpack.c.bf16 %v311_v28, %v267_v26  ;;  %v342_v48 = vmul.f32 %v334_v2, %v1560_v38 }
 0x18a   :  { %v384_v49 = vmul.f32 %v370_v62, %v357_v40  ;;  %v356_v32 = vsel %vm355_vm5, %v352_v31, %v354_v41  ;;  %v359_v61 = vsel %vm355_vm5, %v354_v41, %v1613_v50  ;;  %v418_v50 = vrot.slane %v1297_v47, %v1658_v6 }
 0x18b   :  { %v385_v9 = vmul.f32 %v374_v22, %v356_v32  ;;  %v386_v52 = vmul.f32 %v378_v45, %v359_v61  ;;  %1335 = vmatpush1.bf16.msra.mxu1 %v1334_v36  ;;  %1349 = vmatprep.subr.bf16.mxu0 %v1348_v33  ;;  %v402_v38 = vsel %vm399_vm6, %v1619_v54, %v1615_v51  ;;  %v523_v32 = vld [vmem:[%s2143_s4] sm:$0xff] }
 0x18c   :  { %1351 = vmatpush1.bf16.msra.mxu0 %v1350_v42  ;;  %v396_v4 = vpop.permute.xlu0 %395  ;;  %v1336_v43 = vpack.c.bf16 %v384_v49, %v340_v35  ;;  %v446_v2 = vsel %vm443_vm7, %v1634_v60, %v1621_v55  ;;  %v427_v18 = vmul.f32 %v410_v57, %v402_v38  ;;  %v506_v31 = vrot.slane %v1299_v46, %v1658_v6 }
 0x18d   :  { %v1354_v8 = vpack.c.bf16 %v385_v9, %v341_v34  ;;  %v398_v11 = vpop.permute.xlu1 %397  ;;  %v1352_v13 = vpack.c.bf16 %v386_v52, %v342_v48  ;;  %v401_v1 = vsel %vm399_vm6, %v1615_v51, %v396_v4  ;;  %v471_v19 = vmul.f32 %v454_v58, %v446_v2 }
 0x18e   :  { %1337 = vmatprep.subr.bf16.mxu1 %v1336_v43  ;;  %v400_v15 = vsel %vm399_vm6, %v396_v4, %v398_v11  ;;  %v403_v16 = vsel %vm399_vm6, %v398_v11, %v1619_v54  ;;  %v428_v20 = vmul.f32 %v414_v63, %v401_v1  ;;  %v510_v34 = vrot.slane %v1299_v46, %v1660_v7 }
 0x18f   :  { %1339 = vmatpush1.bf16.msra.mxu1 %v1338_v12  ;;  %1353 = vmatprep.subr.bf16.mxu0 %v1352_v13  ;;  %v429_v45 = vmul.f32 %v418_v50, %v400_v15  ;;  %v430_v54 = vmul.f32 %v422_v10, %v403_v16  ;;  %v1342_v27 = vpack.c.bf16 %v471_v19, %v427_v18  ;;  %v1123_v10 = vld [vmem:[%s2144_s7] sm:$0xff] }
 0x190   :  { %1355 = vmatpush1.bf16.msra.mxu0 %v1354_v8  ;;  %v440_v17 = vpop.permute.xlu0 %439 }
 0x191   :  { %v445_v51 = vsel %vm443_vm7, %v1621_v55, %v440_v17  ;;  %v442_v62 = vpop.permute.xlu1 %441 }
 0x192   :  { %v472_v0 = vmul.f32 %v458_v14, %v445_v51  ;;  %v444_v21 = vsel %vm443_vm7, %v440_v17, %v442_v62  ;;  %v447_v22 = vsel %vm443_vm7, %v442_v62, %v1634_v60  ;;  %v498_v60 = vrot.slane %v1299_v46, %v1623_v56 }
 0x193   :  { %v473_v23 = vmul.f32 %v462_v30, %v444_v21  ;;  %v474_v24 = vmul.f32 %v466_v5, %v447_v22  ;;  %v1899_v30 = vld [vmem:[%s2142_s3] ss:$8 sm:$0xf]  ;;  %v1904_v5 = vld [vmem:[%s2142_s3 + $0x1] ss:$8 sm:$0xf] }
 0x194   :  { %v480_v44 = vpop.permute.xlu0 %479  ;;  %v1340_v55 = vpack.c.bf16 %v472_v0, %v428_v20  ;;  %v741_v17 = vrot.slane %v1899_v30, %v1631_v59  ;;  %v783_v18 = vrot.slane %v1904_v5, %v1631_v59 }
 0x195   :  { %v1358_v25 = vpack.c.bf16 %v473_v23, %v429_v45  ;;  %v482_v26 = vpop.permute.xlu1 %481  ;;  %v1356_v28 = vpack.c.bf16 %v474_v24, %v430_v54 }
 0x196   :  { %1341 = vmatprep.subr.bf16.mxu1 %v1340_v55  ;;  %v490_v35 = vsel %vm487_vm8, %v480_v44, %v482_v26  ;;  %v1305_v55 = vld [vmem:[%s2142_s3 + $0x4] ss:$8 sm:$0xf] }
 0x197   :  { %1343 = vmatpush1.bf16.msra.mxu1 %v1342_v27  ;;  %1357 = vmatprep.subr.bf16.mxu0 %v1356_v28  ;;  %v515_v33 = vmul.f32 %v498_v60, %v490_v35  ;;  %v893_v27 = vrot.slane %v1305_v55, %v1623_v56  ;;  %v1938_v28 = vld [vmem:[%s2142_s3 + $0x2] ss:$8 sm:$0xf]  ;;  %v905_v35 = vrot.slane %v1305_v55, %v1660_v7 }
 0x198   :  { %1359 = vmatpush1.bf16.msra.mxu0 %v1358_v25  ;;  %v484_v37 = vpop.permute.xlu0 %483 }
 0x199   :  { %v489_v47 = vsel %vm487_vm8, %v482_v26, %v484_v37  ;;  %v486_v39 = vpop.permute.xlu1 %485 }
 0x19a   :  { %v516_v40 = vmul.f32 %v502_v29, %v489_v47  ;;  %v488_v41 = vsel %vm487_vm8, %v484_v37, %v486_v39  ;;  %v491_v36 = vsel %vm487_vm8, %v486_v39, %v480_v44  ;;  %v1948_v37 = vld [vmem:[%s2142_s3 + $0x3] ss:$8 sm:$0xf]  ;;  %v1953_v47 = vld [vmem:[%s2142_s3 + $0x5] ss:$8 sm:$0xf]  ;;  %v825_v39 = vrot.slane %v1938_v28, %v1631_v59 }
 0x19b   :  { %v517_v42 = vmul.f32 %v506_v31, %v488_v41  ;;  %v518_v49 = vmul.f32 %v510_v34, %v491_v36  ;;  %v901_v31 = vrot.slane %v1305_v55, %v1658_v6  ;;  %v897_v34 = vrot.slane %v1305_v55, %v1631_v59 }
 0x19c   :  { %586 = vmatprep.subr.mxu1 %v516_v40  ;;  %v867_v41 = vrot.slane %v1948_v37, %v1631_v59  ;;  %v833_v55 = vrot.slane %v1938_v28, %v1660_v7 }
 0x19d   :  { %587 = vmatpush1.msra.mxu1 %v515_v33  ;;  %657 = vmatprep.subr.mxu0 %v518_v49 }
 0x19e   :  { %1300 = vmatmul.mubr.msk.f32.vlgmr.msra.gmra.mrb[0].mxu1 %vm566_vm9, %v523_v32  ;;  %658 = vmatpush1.msra.mxu0 %v517_v42 }
 0x19f   :  { %1301 = vmatmul.mubr.msk.f32.vlgmr.msra.gmra.mrb[4].mxu0 %vm566_vm9, %v523_v32  ;;  %1196 = vmatprep.mubr.f32.mxu1 %v1403_v3 }
 0x1a0   :  { %1267 = vmatprep.mubr.f32.mxu0 %v1403_v3 }
 0x1a9   :  { %v564_v61 = vpop.permute.xlu0 %563 }
 0x271   :  { %v636_v9 = vpop.f32.mrb[0].mxu1 }
 0x272   :  { %v637_v52 = vadd.f32 %v636_v9, %v564_v61  ;;  %v638_v48 = vpop.f32.mrb[1].mxu1  ;;  %v707_v57 = vpop.f32.mrb[4].mxu0  ;;  %v787_v9 = vrot.slane %v1904_v5, %v1658_v6 }
 0x273   :  { %v639_v58 = vadd.f32 %v638_v48, %v564_v61  ;;  %v709_v63 = vpop.f32.mrb[5].mxu0  ;;  %v708_v3 = vadd.f32 %v707_v57, %v564_v61  ;;  %v749_v48 = vrot.slane %v1899_v30, %v1660_v7 }
 0x274   :  { %v712_v4 = vmul.f32 0.2, %v637_v52  ;;  %v710_v13 = vadd.f32 %v709_v63, %v564_v61  ;;  %v935_v61 = vrot.slane %v1953_v47, %v1623_v56  ;;  %v779_v63 = vrot.slane %v1904_v5, %v1623_v56 }
 0x275   :  { %v713_v8 = vmul.f32 0.2, %v639_v58  ;;  %v714_v11 = vmul.f32 0.2, %v708_v3 }
 0x276   :  { %v1829_v43 = vmax.f32 %v637_v52, %v712_v4  ;;  %v715_v38 = vmul.f32 0.2, %v710_v13  ;;  %v737_v52 = vrot.slane %v1899_v30, %v1623_v56  ;;  %v791_v4 = vrot.slane %v1904_v5, %v1660_v7 }
 0x277   :  { %v1835_v50 = vmax.f32 %v639_v58, %v713_v8  ;;  %v1857_v12 = vmax.f32 %v708_v3, %v714_v11  ;;  %v829_v8 = vrot.slane %v1938_v28, %v1658_v6 }
 0x278   :  { %762 = vrot.lane.b32.xlu0 %v1829_v43, %s1405_s1  ;;  %720 = vrot.lane.b32.xlu1 %v1829_v43, %s1404_s22  ;;  %v719_v2 = vmax.f32 %v710_v13, %v715_v38  ;;  %v1958_v40 = vmul.f32 %v893_v27, %v1829_v43  ;;  %v871_v13 = vrot.slane %v1948_v37, %v1658_v6 }
 0x279   :  { %v1963_v42 = vmul.f32 %v901_v31, %v1857_v12  ;;  %v1966_v49 = vmul.f32 %v897_v34, %v1835_v50  ;;  %v863_v34 = vrot.slane %v1948_v37, %v1623_v56 }
 0x27a   :  { %v1968_v32 = vmul.f32 %v905_v35, %v719_v2 }
 0x27c   :  { %804 = vrot.lane.b32.xlu0 %v1829_v43, %s1406_s23  ;;  %722 = vrot.lane.b32.xlu1 %v1835_v50, %s1404_s22 }
 0x280   :  { %846 = vrot.lane.b32.xlu0 %v1829_v43, %s1407_s24  ;;  %764 = vrot.lane.b32.xlu1 %v1835_v50, %s1405_s1 }
 0x284   :  { %918 = vrot.lane.b32.xlu0 %v1829_v43, %s1408_s25  ;;  %806 = vrot.lane.b32.xlu1 %v1835_v50, %s1406_s23 }
 0x288   :  { %960 = vrot.lane.b32.xlu0 %v1829_v43, %s1409_s26  ;;  %848 = vrot.lane.b32.xlu1 %v1835_v50, %s1407_s24 }
 0x28c   :  { %1002 = vrot.lane.b32.xlu0 %v1829_v43, %s1410_s29  ;;  %920 = vrot.lane.b32.xlu1 %v1835_v50, %s1408_s25 }
 0x290   :  { %724 = vrot.lane.b32.xlu0 %v1857_v12, %s1404_s22  ;;  %962 = vrot.lane.b32.xlu1 %v1835_v50, %s1409_s26 }
 0x294   :  { %766 = vrot.lane.b32.xlu0 %v1857_v12, %s1405_s1  ;;  %1004 = vrot.lane.b32.xlu1 %v1835_v50, %s1410_s29 }
 0x298   :  { %808 = vrot.lane.b32.xlu0 %v1857_v12, %s1406_s23  ;;  %726 = vrot.lane.b32.xlu1 %v719_v2, %s1404_s22 }
 0x29c   :  { %850 = vrot.lane.b32.xlu0 %v1857_v12, %s1407_s24  ;;  %768 = vrot.lane.b32.xlu1 %v719_v2, %s1405_s1 }
 0x2a0   :  { %922 = vrot.lane.b32.xlu0 %v1857_v12, %s1408_s25  ;;  %810 = vrot.lane.b32.xlu1 %v719_v2, %s1406_s23 }
 0x2a4   :  { %964 = vrot.lane.b32.xlu0 %v1857_v12, %s1409_s26  ;;  %852 = vrot.lane.b32.xlu1 %v719_v2, %s1407_s24 }
 0x2a8   :  { %1006 = vrot.lane.b32.xlu0 %v1857_v12, %s1410_s29  ;;  %924 = vrot.lane.b32.xlu1 %v719_v2, %s1408_s25 }
 0x2ac   :  { %1044 = vrot.lane.b32.xlu0 %v1829_v43, %s1412_s0  ;;  %966 = vrot.lane.b32.xlu1 %v719_v2, %s1409_s26  ;;  %v745_v43 = vrot.slane %v1899_v30, %v1658_v6 }
 0x2b0   :  { %1048 = vrot.lane.b32.xlu0 %v1857_v12, %s1412_s0  ;;  %1008 = vrot.lane.b32.xlu1 %v719_v2, %s1410_s29 }
 0x2b4   :  { %1126 = vperm.xlu0 %1402, %v1123_v10   ;;  %1046 = vrot.lane.b32.xlu1 %v1835_v50, %s1412_s0  ;;  %v939_v10 = vrot.slane %v1953_v47, %v1631_v59 }
 0x2b8   :  { %1050 = vrot.lane.b32.xlu1 %v719_v2, %s1412_s0 }
 0x2ea   :  { %v1894_v14 = vpop.permute.xlu0 %762  ;;  %v721_v1 = vpop.permute.xlu1 %720 }
 0x2ee   :  { %v1906_v15 = vpop.permute.xlu0 %804  ;;  %v723_v16 = vpop.permute.xlu1 %722 }
 0x2ef   :  { %v730_v19 = vsel %vm149_vm2, %v721_v1, %v723_v16 }
 0x2f0   :  { %v755_v0 = vmul.f32 %v741_v17, %v730_v19 }
 0x2f2   :  { %v1914_v51 = vpop.permute.xlu0 %846  ;;  %v765_v62 = vpop.permute.xlu1 %764 }
 0x2f3   :  { %v772_v20 = vsel %vm192_vm1, %v1894_v14, %v765_v62 }
 0x2f4   :  { %v797_v21 = vmul.f32 %v783_v18, %v772_v20 }
 0x2f6   :  { %v1919_v22 = vpop.permute.xlu0 %918  ;;  %v1921_v45 = vpop.permute.xlu1 %806  ;;  %v1360_v54 = vpack.c.bf16 %v797_v21, %v755_v0  ;;  %v2013_v21 = vld [vmem:[%s2142_s3 + $0x6] ss:$8 sm:$0xf] }
 0x2f7   :  { %v814_v11 = vsel %vm236_vm4, %v1906_v15, %v1921_v45  ;;  %v981_v31 = vrot.slane %v2013_v21, %v1631_v59 }
 0x2f8   :  { %1361 = vmatprep.subr.bf16.mxu1 %v1360_v54  ;;  %v839_v20 = vmul.f32 %v825_v39, %v814_v11  ;;  %v821_v54 = vrot.slane %v1938_v28, %v1623_v56  ;;  %v2031_v28 = vld [vmem:[%s2142_s3 + $0x7] ss:$8 sm:$0xf] }
 0x2fa   :  { %v1923_v23 = vpop.permute.xlu0 %960  ;;  %v849_v24 = vpop.permute.xlu1 %848 }
 0x2fb   :  { %v856_v57 = vsel %vm280_vm3, %v1914_v51, %v849_v24 }
 0x2fc   :  { %v881_v30 = vmul.f32 %v867_v41, %v856_v57  ;;  %v1023_v57 = vrot.slane %v2031_v28, %v1631_v59 }
 0x2fe   :  { %v1925_v44 = vpop.permute.xlu0 %1002  ;;  %v1927_v46 = vpop.permute.xlu1 %920 }
 0x302   :  { %v725_v25 = vpop.permute.xlu0 %724  ;;  %v1932_v26 = vpop.permute.xlu1 %962 }
 0x303   :  { %v729_v12 = vsel %vm149_vm2, %v723_v16, %v725_v25 }
 0x304   :  { %v756_v0 = vmul.f32 %v745_v43, %v729_v12 }
 0x306   :  { %v767_v29 = vpop.permute.xlu0 %766  ;;  %v1940_v60 = vpop.permute.xlu1 %1004 }
 0x307   :  { %v771_v58 = vsel %vm192_vm1, %v765_v62, %v767_v29 }
 0x308   :  { %v798_v5 = vmul.f32 %v787_v9, %v771_v58 }
 0x30a   :  { %v809_v36 = vpop.permute.xlu0 %808  ;;  %v727_v33 = vpop.permute.xlu1 %726  ;;  %v1378_v35 = vpack.c.bf16 %v798_v5, %v756_v0 }
 0x30b   :  { %v728_v50 = vsel %vm149_vm2, %v725_v25, %v727_v33  ;;  %v731_v3 = vsel %vm149_vm2, %v727_v33, %v721_v1  ;;  %v1364_v33 = vpack.c.bf16 %v881_v30, %v839_v20  ;;  %v813_v9 = vsel %vm236_vm4, %v1921_v45, %v809_v36 }
 0x30c   :  { %v754_v18 = vmul.f32 %v737_v52, %v731_v3  ;;  %v757_v19 = vmul.f32 %v749_v48, %v728_v50  ;;  %v943_v45 = vrot.slane %v1953_v47, %v1658_v6  ;;  %v840_v43 = vmul.f32 %v829_v8, %v813_v9 }
 0x30d   :  { %v977_v8 = vrot.slane %v2013_v21, %v1623_v56 }
 0x30e   :  { %v851_v38 = vpop.permute.xlu0 %850  ;;  %v769_v2 = vpop.permute.xlu1 %768 }
 0x30f   :  { %v770_v1 = vsel %vm192_vm1, %v767_v29, %v769_v2  ;;  %v773_v17 = vsel %vm192_vm1, %v769_v2, %v1894_v14  ;;  %v855_v39 = vsel %vm280_vm3, %v849_v24, %v851_v38  ;;  %v875_v24 = vrot.slane %v1948_v37, %v1660_v7 }
 0x310   :  { %v796_v16 = vmul.f32 %v779_v63, %v773_v17  ;;  %v799_v62 = vmul.f32 %v791_v4, %v770_v1  ;;  %v882_v58 = vmul.f32 %v871_v13, %v855_v39 }
 0x312   :  { %v1362_v25 = vpack.c.bf16 %v796_v16, %v754_v18  ;;  %v923_v27 = vpop.permute.xlu0 %922  ;;  %v811_v14 = vpop.permute.xlu1 %810  ;;  %v1376_v29 = vpack.c.bf16 %v799_v62, %v757_v19  ;;  %v1382_v30 = vpack.c.bf16 %v882_v58, %v840_v43  ;;  %v1086_v43 = vld [vmem:[%s2145_s6] sm:$0xff] }
 0x313   :  { %v927_v41 = vsel %vm355_vm5, %v1927_v46, %v923_v27  ;;  %v815_v52 = vsel %vm236_vm4, %v811_v14, %v1906_v15  ;;  %v812_v48 = vsel %vm236_vm4, %v809_v36, %v811_v14  ;;  %v928_v15 = vsel %vm355_vm5, %v1919_v22, %v1927_v46 }
 0x314   :  { %1363 = vmatpush1.bf16.msra.mxu1 %v1362_v25  ;;  %1377 = vmatprep.subr.bf16.mxu0 %v1376_v29  ;;  %v953_v63 = vmul.f32 %v939_v10, %v927_v41  ;;  %v947_v36 = vrot.slane %v1953_v47, %v1660_v7  ;;  %v838_v50 = vmul.f32 %v821_v54, %v815_v52 }
 0x315   :  { %1365 = vmatprep.subr.bf16.mxu1 %v1364_v33  ;;  %1379 = vmatpush1.bf16.msra.mxu0 %v1378_v35  ;;  %v841_v12 = vmul.f32 %v833_v55, %v812_v48  ;;  %v952_v10 = vmul.f32 %v935_v61, %v928_v15  ;;  %v985_v29 = vrot.slane %v2013_v21, %v1658_v6 }
 0x316   :  { %v965_v4 = vpop.permute.xlu0 %964  ;;  %v853_v37 = vpop.permute.xlu1 %852  ;;  %v1368_v19 = vpack.c.bf16 %v953_v63, %v1966_v49  ;;  %v970_v49 = vsel %vm399_vm6, %v1923_v23, %v1932_v26 }
 0x317   :  { %v854_v3 = vsel %vm280_vm3, %v851_v38, %v853_v37  ;;  %v857_v11 = vsel %vm280_vm3, %v853_v37, %v1914_v51  ;;  %v969_v46 = vsel %vm399_vm6, %v1932_v26, %v965_v4  ;;  %v1019_v38 = vrot.slane %v2031_v28, %v1623_v56 }
 0x318   :  { %v880_v13 = vmul.f32 %v863_v34, %v857_v11  ;;  %v883_v2 = vmul.f32 %v875_v24, %v854_v3  ;;  %v1012_v51 = vsel %vm443_vm7, %v1925_v44, %v1940_v60  ;;  %v995_v47 = vmul.f32 %v981_v31, %v969_v46 }
 0x319   :  { %v1370_v55 = vpack.c.bf16 %v952_v10, %v1958_v40  ;;  %v989_v40 = vrot.slane %v2013_v21, %v1660_v7  ;;  %v994_v31 = vmul.f32 %v977_v8, %v970_v49  ;;  %v1027_v26 = vrot.slane %v2031_v28, %v1658_v6 }
 0x31a   :  { %v1366_v5 = vpack.c.bf16 %v880_v13, %v838_v50  ;;  %v1007_v1 = vpop.permute.xlu0 %1006  ;;  %v925_v17 = vpop.permute.xlu1 %924  ;;  %v1380_v18 = vpack.c.bf16 %v883_v2, %v841_v12 }
 0x31b   :  { %v1011_v61 = vsel %vm443_vm7, %v1940_v60, %v1007_v1  ;;  %v926_v16 = vsel %vm355_vm5, %v923_v27, %v925_v17  ;;  %v929_v62 = vsel %vm355_vm5, %v925_v17, %v1919_v22  ;;  %v1036_v60 = vmul.f32 %v1019_v38, %v1012_v51 }
 0x31c   :  { %v1037_v20 = vmul.f32 %v1023_v57, %v1011_v61  ;;  %v954_v0 = vmul.f32 %v943_v45, %v926_v16  ;;  %v955_v54 = vmul.f32 %v947_v36, %v929_v62  ;;  %1367 = vmatpush1.bf16.msra.mxu1 %v1366_v5  ;;  %1381 = vmatprep.subr.bf16.mxu0 %v1380_v18 }
 0x31d   :  { %1369 = vmatprep.subr.bf16.mxu1 %v1368_v19  ;;  %1383 = vmatpush1.bf16.msra.mxu0 %v1382_v30  ;;  %v1374_v39 = vpack.c.bf16 %v1036_v60, %v994_v31 }
 0x31e   :  { %v1386_v25 = vpack.c.bf16 %v954_v0, %v1963_v42  ;;  %v967_v27 = vpop.permute.xlu1 %966  ;;  %v1384_v22 = vpack.c.bf16 %v955_v54, %v1968_v32  ;;  %v1372_v14 = vpack.c.bf16 %v1037_v20, %v995_v47  ;;  %v1045_v34 = vpop.permute.xlu0 %1044  ;;  %v1031_v42 = vrot.slane %v2031_v28, %v1660_v7  ;;  %v1309_v32 = vld [vmem:[%s2142_s3 + $0x20] ss:$8 sm:$0xf] }
 0x31f   :  { %v968_v35 = vsel %vm399_vm6, %v965_v4, %v967_v27  ;;  %v971_v21 = vsel %vm399_vm6, %v967_v27, %v1923_v23  ;;  %v1061_v9 = vrot.slane %v1309_v32, %v1623_v56  ;;  %v1065_v52 = vrot.slane %v1309_v32, %v1631_v59 }
 0x320   :  { %1371 = vmatpush1.bf16.msra.mxu1 %v1370_v55  ;;  %1385 = vmatprep.subr.bf16.mxu0 %v1384_v22  ;;  %v996_v24 = vmul.f32 %v985_v29, %v968_v35  ;;  %v997_v48 = vmul.f32 %v989_v40, %v971_v21  ;;  %v1069_v56 = vrot.slane %v1309_v32, %v1658_v6 }
 0x321   :  { %1373 = vmatprep.subr.bf16.mxu1 %v1372_v14  ;;  %1387 = vmatpush1.bf16.msra.mxu0 %v1386_v25  ;;  %v1073_v59 = vrot.slane %v1309_v32, %v1660_v7 }
 0x322   :  { %v1009_v41 = vpop.permute.xlu1 %1008  ;;  %v1049_v23 = vpop.permute.xlu0 %1048 }
 0x323   :  { %v1010_v33 = vsel %vm443_vm7, %v1007_v1, %v1009_v41  ;;  %v1013_v28 = vsel %vm443_vm7, %v1009_v41, %v1925_v44 }
 0x324   :  { %v1038_v57 = vmul.f32 %v1027_v26, %v1010_v33  ;;  %v1039_v45 = vmul.f32 %v1031_v42, %v1013_v28  ;;  %1375 = vmatpush1.bf16.msra.mxu1 %v1374_v39 }
 0x326   :  { %v1390_v15 = vpack.c.bf16 %v1038_v57, %v996_v24  ;;  %v1047_v58 = vpop.permute.xlu1 %1046  ;;  %v1388_v63 = vpack.c.bf16 %v1039_v45, %v997_v48 }
 0x327   :  { %v1053_v4 = vsel %vm487_vm8, %v1047_v58, %v1049_v23  ;;  %v1054_v37 = vsel %vm487_vm8, %v1045_v34, %v1047_v58 }
 0x328   :  { %v1078_v44 = vmul.f32 %v1061_v9, %v1054_v37  ;;  %v1079_v36 = vmul.f32 %v1065_v52, %v1053_v4  ;;  %1389 = vmatprep.subr.bf16.mxu0 %v1388_v63 }
 0x329   :  { %1391 = vmatpush1.bf16.msra.mxu0 %v1390_v15 }
 0x32a   :  { %v1051_v50 = vpop.permute.xlu1 %1050  ;;  %1148 = vmatprep.subr.mxu1 %v1079_v36 }
 0x32b   :  { %v1052_v3 = vsel %vm487_vm8, %v1049_v23, %v1051_v50  ;;  %v1055_v11 = vsel %vm487_vm8, %v1051_v50, %v1045_v34  ;;  %1149 = vmatpush1.msra.mxu1 %v1078_v44 }
 0x32c   :  { %v1080_v12 = vmul.f32 %v1069_v56, %v1052_v3  ;;  %v1081_v46 = vmul.f32 %v1073_v59, %v1055_v11  ;;  %1310 = vmatmul.mubr.msk.f32.vlgmr.msra.gmra.mrb[2].mxu1 %vm566_vm9, %v1086_v43 }
 0x32e   :  { %1219 = vmatprep.subr.mxu0 %v1081_v46 }
 0x32f   :  { %1220 = vmatpush1.msra.mxu0 %v1080_v12 }
 0x330   :  { %1311 = vmatmul.mubr.msk.f32.vlgmr.msra.gmra.mrb[6].mxu0 %vm566_vm9, %v1086_v43 }
 0x333   :  { %v1127_v6 = vpop.permute.xlu0 %1126 }
 0x3ff   :  { %v1198_v7 = vpop.f32.mrb[2].mxu1 }
 0x400   :  { %v1199_v13 = vadd.f32 %v1198_v7, %v1127_v6  ;;  %v1200_v2 = vpop.f32.mrb[3].mxu1 }
 0x401   :  { %v1201_v10 = vadd.f32 %v1200_v2, %v1127_v6 }
 0x402   :  { %v1274_v8 = vmul.f32 0.2, %v1199_v13 }
 0x403   :  { %v1275_v38 = vmul.f32 0.2, %v1201_v10  ;;  %v1269_v51 = vpop.f32.mrb[6].mxu0 }
 0x404   :  { %v1278_v30 = vmax.f32 %v1199_v13, %v1274_v8  ;;  %v1270_v53 = vadd.f32 %v1269_v51, %v1127_v6  ;;  %v1271_v5 = vpop.f32.mrb[7].mxu0 }
 0x405   :  { %v1279_v1 = vmax.f32 %v1201_v10, %v1275_v38  ;;  %v1272_v17 = vadd.f32 %v1271_v5, %v1127_v6 }
 0x406   :  { %1282 = vst [vmem:[%s2146_s8] sm:$0xff] %v1278_v30  ;;  %v1276_v18 = vmul.f32 0.2, %v1270_v53 }
 0x407   :  { %1283 = vst [vmem:[%s2146_s8 + $0x8] sm:$0xff] %v1279_v1  ;;  %v1277_v19 = vmul.f32 0.2, %v1272_v17 }
 0x408   :  { %v1280_v47 = vmax.f32 %v1270_v53, %v1276_v18 }
 0x409   :  { %v1281_v61 = vmax.f32 %v1272_v17, %v1277_v19 }
 0x40a   :  { %1284 = vst [vmem:[%s2146_s8 + $0x10] sm:$0xff] %v1280_v47 }
 0x40b   :  { %1285 = vst [vmem:[%s2146_s8 + $0x18] sm:$0xff] %v1281_v61 }

</bundles_post_ra>
